<compile_context>
chip_gen: v5e
topology: v5e:2x2
jax: 0.10.0
libtpu: 0.0.40
codegen_flags: <defaults>
</compile_context>

<pallas_src>
import functools

import jax
import jax.numpy as jnp
from jax.experimental import pallas as pl
from jax.experimental.pallas import tpu as pltpu

_LANE = 128


def _chip_config():
    """Return (vmem_limit_bytes, single_pass_slab_limit_bytes, extra_buffering)."""
    try:
        cap = int(pltpu.get_tpu_info().vmem_capacity_bytes)
        if cap <= 0:
            raise ValueError("bad vmem capacity")
        vmem_limit = (cap * 3) // 4            # ~96 MiB on v5e/v6e, ~48 MiB on v7x
        slab_limit = vmem_limit // 5           # ~19 MiB on v5e/v6e, ~9.6 MiB on v7x
        # v7x-class: small VMEM but 3.2 TB/s HBM -> deeper buffering on pass 2.
        extra_buffering = cap <= (64 << 20)
    except Exception:
        # Unknown chip: conservative numbers that fit every generation (incl. v7x).
        vmem_limit = 48 << 20
        slab_limit = 9 << 20
        extra_buffering = False
    return vmem_limit, slab_limit, extra_buffering


def _fc_sigmoid(avg, mx, w1_ref, w2_ref):
    """Shared-MLP channel gate.  avg, mx: (C, 1) f32 -> att: (C, 1) f32."""
    c = avg.shape[0]
    # Stack [avg | max] into (C, 2) so the two FC branches run as ONE matmul pair.
    col = jax.lax.broadcasted_iota(jnp.int32, (c, 2), 1)
    v2 = jnp.where(col == 0, avg, mx)                                    # (C, 2)
    w1 = w1_ref[...].astype(jnp.float32)                                 # (C_hid, C)
    w2 = w2_ref[...].astype(jnp.float32)                                 # (C, C_hid)
    h2 = jnp.maximum(jnp.dot(w1, v2, preferred_element_type=jnp.float32), 0.0)
    y2 = jnp.dot(w2, h2, preferred_element_type=jnp.float32)             # (C, 2)
    # fc(avg) + fc(max) == row-sum of the two columns.
    return jax.nn.sigmoid(jnp.sum(y2, axis=1, keepdims=True))            # (C, 1)


def _ca_fused_kernel(x_ref, w1_ref, w2_ref, o_ref, *, inv_hw):
    """Single-pass kernel: whole (C, HW) slab of one batch element.

    The block covers the FULL HW extent, so reductions see only valid data and
    no masking is needed.
    """
    x = x_ref[...]                                  # native dtype, no f32 copy
    psum = jnp.sum(x, axis=1, keepdims=True, dtype=jnp.float32)          # (C, 1)
    pmax = jnp.max(x, axis=1, keepdims=True).astype(jnp.float32)         # (C, 1)
    att = _fc_sigmoid(psum * inv_hw, pmax, w1_ref, w2_ref)               # (C, 1) f32
    # Broadcast multiply in the input's native dtype (bf16 math on v6e/v7x).
    o_ref[...] = att.astype(x.dtype) * x


def _ca_reduce_fc_kernel(x_ref, w1_ref, w2_ref, att_ref, sum_acc, max_acc, *,
                         hw_valid, t_hw, inv_hw, ragged):
    """Pass 1: grid=(N, HW_tiles).  HW axis is a sequential reduction."""
    h = pl.program_id(1)
    last = pl.num_programs(1) - 1

    @pl.when(h == 0)
    def _init():
        sum_acc[...] = jnp.zeros_like(sum_acc)
        max_acc[...] = jnp.full_like(max_acc, -jnp.inf)

    x = x_ref[...]                                   # (C, T_HW) native dtype

    def _accumulate(xs, xm):
        sum_acc[...] += jnp.sum(xs, axis=1, keepdims=True, dtype=jnp.float32)
        max_acc[...] = jnp.maximum(
            max_acc[...], jnp.max(xm, axis=1, keepdims=True).astype(jnp.float32))

    if ragged:
        # Only the FINAL HW tile extends past HW.  Pallas edge-block read
        # padding is unspecified, so mask sum (->0) and max (->-inf) there, and
        # keep the unmasked fast path for all other tiles (VALU stays off the
        # critical path on v7x).
        @pl.when(h == last)
        def _tail():
            lane = jax.lax.broadcasted_iota(jnp.int32, x.shape, 1) + h * t_hw
            valid = lane < hw_valid
            _accumulate(jnp.where(valid, x, jnp.zeros_like(x)),
                        jnp.where(valid, x, jnp.full_like(x, -jnp.inf)))

        @pl.when(h != last)
        def _body():
            _accumulate(x, x)
    else:
        _accumulate(x, x)

    @pl.when(h == last)
    def _finalize():
        att_ref[...] = _fc_sigmoid(sum_acc[...] * inv_hw, max_acc[...],
                                   w1_ref, w2_ref)


def _ca_apply_kernel(att_ref, x_ref, o_ref):
    """Pass 2: out = att * x.  Fully parallel grid; ragged-tail stores are
    masked automatically by Pallas."""
    x = x_ref[...]                                   # (C, T_HW) native dtype
    o_ref[...] = att_ref[...].astype(x.dtype) * x    # broadcast over lanes


def _pick_hw_tile(hw, c_rows, itemsize, target_bytes):
    """Largest multiple-of-128 lane tile whose (C_pad, t) slab is <= target.

    No divisibility constraint on HW: the grid uses pl.cdiv and the ragged last
    tile is masked in-kernel.
    """
    max_lanes = max(_LANE, (target_bytes // max(1, c_rows * itemsize)) // _LANE * _LANE)
    hw_128 = int(pl.cdiv(hw, _LANE)) * _LANE
    return int(min(hw_128, max_lanes))


def channel_attention(x_nchw, w1, w2, *,
                      single_pass_tile_limit_bytes=None,
                      hw_tile=None,
                      vmem_limit_bytes=None):
    """x_nchw: (N, C, H, W); w1: (C//r, C); w2: (C, C//r) (1x1 convs, bias=False)."""
    N, C, H, W = x_nchw.shape
    HW = H * W
    c_hid, c_in = w1.shape
    assert c_in == C and w2.shape == (C, c_hid)
    itemsize = int(jnp.dtype(x_nchw.dtype).itemsize)
    inv_hw = 1.0 / float(HW)

    cfg_vmem, cfg_slab, extra_buffering = _chip_config()
    vmem_limit = int(vmem_limit_bytes) if vmem_limit_bytes is not None else cfg_vmem
    slab_limit = (int(single_pass_tile_limit_bytes)
                  if single_pass_tile_limit_bytes is not None else cfg_slab)

    # No host-side padding: keep the true HW and let the kernels handle ragged
    # lane tiles.  This avoids two extra HBM passes over x/out.
    x = x_nchw.reshape(N, C, HW)

    # VMEM footprint of one per-batch slab (layout-padded to (8, 128) tiles).
    c_pad = int(pl.cdiv(C, 8)) * 8
    hw_128 = int(pl.cdiv(HW, _LANE)) * _LANE
    slab_bytes = c_pad * hw_128 * itemsize
    single_pass = slab_bytes <= slab_limit

    w_bytes = int(w1.size) * int(jnp.dtype(w1.dtype).itemsize) + \
              int(w2.size) * int(jnp.dtype(w2.dtype).itemsize)
    xo_bytes = int(N * C * HW) * itemsize

    if single_pass:
        out = pl.pallas_call(
            functools.partial(_ca_fused_kernel, inv_hw=inv_hw),
            out_shape=jax.ShapeDtypeStruct((N, C, HW), x.dtype),
            grid_spec=pltpu.PrefetchScalarGridSpec(
                num_scalar_prefetch=0,
                grid=(N,),
                in_specs=[
                    pl.BlockSpec((None, C, HW), lambda b: (b, 0, 0)),  # x slab
                    pl.BlockSpec((c_hid, C), lambda b: (0, 0)),        # w1
                    pl.BlockSpec((C, c_hid), lambda b: (0, 0)),        # w2
                ],
                out_specs=pl.BlockSpec((None, C, HW), lambda b: (b, 0, 0)),
            ),
            compiler_params=pltpu.CompilerParams(
                dimension_semantics=("parallel",),
                vmem_limit_bytes=vmem_limit),
            cost_estimate=pl.CostEstimate(
                flops=3 * N * C * HW + 8 * N * C * c_hid,
                transcendentals=N * C,
                bytes_accessed=2 * xo_bytes + N * w_bytes),
        )(x, w1, w2)
        return out.reshape(N, C, H, W)

    # ---- Two-pass fallback (per-batch slab does not fit the VMEM budget) ----
    if hw_tile is not None:
        t_hw = int(hw_tile)
    else:
        target = max(2 << 20, min(4 << 20, slab_limit // 3))   # 2-4 MiB lane tiles
        t_hw = _pick_hw_tile(HW, c_pad, itemsize, target)
    assert t_hw % _LANE == 0
    n_hw = int(pl.cdiv(HW, t_hw))
    ragged = (HW % t_hw) != 0

    # Pass 1: tiled global sum/max, shared MLP on the last tile -> att (N, C, 1).
    att = pl.pallas_call(
        functools.partial(_ca_reduce_fc_kernel, hw_valid=HW, t_hw=t_hw,
                          inv_hw=inv_hw, ragged=ragged),
        out_shape=jax.ShapeDtypeStruct((N, C, 1), jnp.float32),
        grid_spec=pltpu.PrefetchScalarGridSpec(
            num_scalar_prefetch=0,
            grid=(N, n_hw),
            in_specs=[
                pl.BlockSpec((None, C, t_hw), lambda b, h: (b, 0, h)),  # x
                pl.BlockSpec((c_hid, C), lambda b, h: (0, 0)),          # w1
                pl.BlockSpec((C, c_hid), lambda b, h: (0, 0)),          # w2
            ],
            out_specs=pl.BlockSpec((None, C, 1), lambda b, h: (b, 0, 0)),
            scratch_shapes=[pltpu.VMEM((C, 1), jnp.float32),   # sum accumulator
                            pltpu.VMEM((C, 1), jnp.float32)],  # max accumulator
        ),
        compiler_params=pltpu.CompilerParams(
            dimension_semantics=("parallel", "arbitrary"),
            vmem_limit_bytes=vmem_limit),
        cost_estimate=pl.CostEstimate(
            flops=2 * N * C * HW + 8 * N * C * c_hid,
            transcendentals=N * C,
            bytes_accessed=xo_bytes + N * w_bytes + N * C * 4),
    )(x, w1, w2)

    # Pass 2: out = att * x, both grid axes fully parallel (megacore-friendly).
    if extra_buffering:
        x_in_spec = pl.BlockSpec((None, C, t_hw), lambda b, h: (b, 0, h),
                                 pipeline_mode=pl.Buffered(3))
    else:
        x_in_spec = pl.BlockSpec((None, C, t_hw), lambda b, h: (b, 0, h))

    out = pl.pallas_call(
        _ca_apply_kernel,
        out_shape=jax.ShapeDtypeStruct((N, C, HW), x.dtype),
        grid_spec=pltpu.PrefetchScalarGridSpec(
            num_scalar_prefetch=0,
            grid=(N, n_hw),
            in_specs=[
                pl.BlockSpec((None, C, 1), lambda b, h: (b, 0, 0)),     # att
                x_in_spec,                                              # x
            ],
            out_specs=pl.BlockSpec((None, C, t_hw), lambda b, h: (b, 0, h)),
        ),
        compiler_params=pltpu.CompilerParams(
            dimension_semantics=("parallel", "parallel"),
            vmem_limit_bytes=vmem_limit),
        cost_estimate=pl.CostEstimate(
            flops=N * C * HW,
            transcendentals=0,
            bytes_accessed=2 * xo_bytes + N * C * 4),
    )(att, x)

    return out.reshape(N, C, H, W)


def channel_attention_ref(x, w1, w2):
    """Pure-JAX reference for validation."""
    avg = jnp.mean(x, axis=(2, 3))                      # (N, C)
    mx = jnp.max(x, axis=(2, 3))                        # (N, C)

    def fc(v):
        h = jnp.maximum(v @ w1.T, 0.0)                  # (N, C_hid)
        return h @ w2.T                                 # (N, C)

    att = jax.nn.sigmoid(fc(avg) + fc(mx))              # (N, C)
    return att[:, :, None, None] * x


if __name__ == "__main__":
    key = jax.random.PRNGKey(0)
    kx, k1, k2, kx2, kx3 = jax.random.split(key, 5)

    # in_planes must be >= ratio for the PyTorch module to be well-formed.
    N, C, ratio = 2, 32, 16
    C_hid = C // ratio
    w1 = jax.random.normal(k1, (C_hid, C), dtype=jnp.float32) * 0.1
    w2 = jax.random.normal(k2, (C, C_hid), dtype=jnp.float32) * 0.1

    # 1) Lane-aligned spatial size -> fused single-pass kernel.
    H = W = 16
    x = jax.random.normal(kx, (N, C, H, W), dtype=jnp.float32)
    out = jax.block_until_ready(channel_attention(x, w1, w2))
    ref = channel_attention_ref(x, w1, w2)
    assert out.shape == (N, C, H, W)
    assert jnp.allclose(out, ref, atol=1e-5, rtol=1e-5), "single-pass mismatch"

    # 2) Non-128-multiple spatial size, still single-pass: no host pad/slice,
    #    the full-extent block handles the ragged lane dim natively.
    H2 = W2 = 14                               # HW = 196
    x2 = jax.random.normal(kx2, (N, C, H2, W2), dtype=jnp.float32)
    out2 = jax.block_until_ready(channel_attention(x2, w1, w2))
    ref2 = channel_attention_ref(x2, w1, w2)
    assert out2.shape == (N, C, H2, W2)
    assert jnp.allclose(out2, ref2, atol=1e-5, rtol=1e-5), "ragged single-pass mismatch"

    # 3) Forced onto the tiled two-pass path with a ragged last HW tile
    #    (exercises masked tail reduction + sequential accumulation + apply pass).
    H3 = W3 = 20                               # HW = 400 -> 4 tiles of 128, last ragged
    x3 = jax.random.normal(kx3, (N, C, H3, W3), dtype=jnp.float32)
    out3 = jax.block_until_ready(
        channel_attention(x3, w1, w2,
                          single_pass_tile_limit_bytes=0, hw_tile=128))
    ref3 = channel_attention_ref(x3, w1, w2)
    assert out3.shape == (N, C, H3, W3)
    assert jnp.allclose(out3, ref3, atol=1e-5, rtol=1e-5), "two-pass mismatch"

    print("KERNEL_OK")
</pallas_src>

<mosaic_0001>
module attributes {stable_mosaic.version = 11 : i64} {
  func.func @_ca_fused_kernel(%arg0: i32, %arg1: memref<1x32x256xf32, #tpu.memory_space<vmem>>, %arg2: memref<2x32xf32, #tpu.memory_space<vmem>>, %arg3: memref<32x2xf32, #tpu.memory_space<vmem>>, %arg4: memref<1x32x256xf32, #tpu.memory_space<vmem>>) attributes {dimension_semantics = [#tpu.dimension_semantics<parallel>], iteration_bounds = array<i64: 2>, scalar_prefetch = 0 : i64, scratch_operands = 0 : i64, tpu.core_type = #tpu.core_type<tc>, window_params = [{transform_indices = @transform_0, window_bounds = array<i64: 1, 32, 256>}, {pipeline_mode = #tpu.pipeline_mode<synchronous>, transform_indices = @transform_1, window_bounds = array<i64: 2, 32>}, {pipeline_mode = #tpu.pipeline_mode<synchronous>, transform_indices = @transform_2, window_bounds = array<i64: 32, 2>}, {transform_indices = @transform_3, window_bounds = array<i64: 1, 32, 256>}]} {
    %c0 = arith.constant 0 : index
    %c0_0 = arith.constant 0 : index
    %c0_1 = arith.constant 0 : index
    %0 = vector.load %arg1[%c0, %c0_0, %c0_1] : memref<1x32x256xf32, #tpu.memory_space<vmem>>, vector<1x32x256xf32>
    %1 = vector.shape_cast %0 : vector<1x32x256xf32> to vector<32x256xf32>
    %cst = arith.constant dense<0.000000e+00> : vector<32xf32>
    %2 = vector.multi_reduction <add>, %1, %cst [1] : vector<32x256xf32> to vector<32xf32>
    %3 = vector.shape_cast %2 : vector<32xf32> to vector<32x1xf32>
    %cst_2 = arith.constant dense<0xFF800000> : vector<32xf32>
    %4 = vector.multi_reduction <maximumf>, %1, %cst_2 [1] : vector<32x256xf32> to vector<32xf32>
    %5 = vector.shape_cast %4 : vector<32xf32> to vector<32x1xf32>
    %cst_3 = arith.constant 3.906250e-03 : f32
    %6 = vector.broadcast %cst_3 : f32 to vector<32x1xf32>
    %7 = arith.mulf %3, %6 : vector<32x1xf32>
    %8 = tpu.iota {dimensions = array<i32: 1>} : vector<32x2xi32>
    %c0_i32 = arith.constant 0 : i32
    %9 = vector.broadcast %c0_i32 : i32 to vector<32x2xi32>
    %10 = arith.cmpi eq, %8, %9 : vector<32x2xi32>
    %11 = vector.shape_cast %7 : vector<32x1xf32> to vector<32x1xf32>
    %12 = vector.broadcast %11 : vector<32x1xf32> to vector<32x2xf32>
    %13 = vector.shape_cast %5 : vector<32x1xf32> to vector<32x1xf32>
    %14 = vector.broadcast %13 : vector<32x1xf32> to vector<32x2xf32>
    %15 = arith.select %10, %12, %14 : vector<32x2xi1>, vector<32x2xf32>
    %c0_4 = arith.constant 0 : index
    %c0_5 = arith.constant 0 : index
    %16 = vector.load %arg2[%c0_4, %c0_5] : memref<2x32xf32, #tpu.memory_space<vmem>>, vector<2x32xf32>
    %c0_6 = arith.constant 0 : index
    %c0_7 = arith.constant 0 : index
    %17 = vector.load %arg3[%c0_6, %c0_7] : memref<32x2xf32, #tpu.memory_space<vmem>>, vector<32x2xf32>
    %cst_8 = arith.constant dense<0.000000e+00> : vector<2x2xf32>
    %18 = tpu.matmul %16, %15, %cst_8 {dimension_numbers = #tpu.dot_dimension_numbers<[1], [0], [0], [1], [0, 0, 1, 1], [], []>} : vector<2x32xf32>, vector<32x2xf32>, vector<2x2xf32> -> vector<2x2xf32>
    %cst_9 = arith.constant 0.000000e+00 : f32
    %19 = vector.broadcast %cst_9 : f32 to vector<2x2xf32>
    %20 = arith.maximumf %18, %19 : vector<2x2xf32>
    %cst_10 = arith.constant dense<0.000000e+00> : vector<32x2xf32>
    %21 = tpu.matmul %17, %20, %cst_10 {dimension_numbers = #tpu.dot_dimension_numbers<[1], [0], [0], [1], [0, 0, 1, 1], [], []>} : vector<32x2xf32>, vector<2x2xf32>, vector<32x2xf32> -> vector<32x2xf32>
    %cst_11 = arith.constant dense<0.000000e+00> : vector<32xf32>
    %22 = vector.multi_reduction <add>, %21, %cst_11 [1] : vector<32x2xf32> to vector<32xf32>
    %23 = vector.shape_cast %22 : vector<32xf32> to vector<32x1xf32>
    %24 = arith.negf %23 : vector<32x1xf32>
    %25 = math.exp %24 : vector<32x1xf32>
    %cst_12 = arith.constant 1.000000e+00 : f32
    %26 = vector.broadcast %cst_12 : f32 to vector<32x1xf32>
    %27 = arith.addf %26, %25 : vector<32x1xf32>
    %28 = arith.divf %26, %27 : vector<32x1xf32>
    %29 = vector.broadcast %28 : vector<32x1xf32> to vector<32x256xf32>
    %30 = arith.mulf %29, %1 : vector<32x256xf32>
    %c0_13 = arith.constant 0 : index
    %c0_14 = arith.constant 0 : index
    %c0_15 = arith.constant 0 : index
    %31 = vector.load %arg4[%c0_13, %c0_14, %c0_15] : memref<1x32x256xf32, #tpu.memory_space<vmem>>, vector<1x32x256xf32>
    %32 = vector.shape_cast %31 : vector<1x32x256xf32> to vector<32x256xf32>
    %33 = vector.shape_cast %30 : vector<32x256xf32> to vector<1x32x256xf32>
    tpu.vector_store %arg4[%c0_13, %c0_14, %c0_15], %33 {strides = array<i32>} : memref<1x32x256xf32, #tpu.memory_space<vmem>>, vector<1x32x256xf32>,
    return
  }
  func.func @transform_0(%arg0: i32) -> (i32, i32, i32) {
    %c0_i32 = arith.constant 0 : i32
    %c0_i32_0 = arith.constant 0 : i32
    %c0_i32_1 = arith.constant 0 : i32
    return %arg0, %c0_i32, %c0_i32_0 : i32, i32, i32
  }
  func.func @transform_1(%arg0: i32) -> (i32, i32) {
    %c0_i32 = arith.constant 0 : i32
    %c0_i32_0 = arith.constant 0 : i32
    %c0_i32_1 = arith.constant 0 : i32
    return %c0_i32, %c0_i32_0 : i32, i32
  }
  func.func @transform_2(%arg0: i32) -> (i32, i32) {
    %c0_i32 = arith.constant 0 : i32
    %c0_i32_0 = arith.constant 0 : i32
    %c0_i32_1 = arith.constant 0 : i32
    return %c0_i32, %c0_i32_0 : i32, i32
  }
  func.func @transform_3(%arg0: i32) -> (i32, i32, i32) {
    %c0_i32 = arith.constant 0 : i32
    %c0_i32_0 = arith.constant 0 : i32
    %c0_i32_1 = arith.constant 0 : i32
    return %arg0, %c0_i32, %c0_i32_0 : i32, i32, i32
  }
}

</mosaic_0001>

<bundles_post_ra>
// kernel: tpu_custom_call.1
= control target key start
LH: loop header
LB: loop body
LE: loop exit
PB: predicated region body
PF: predicated region fallthrough
CT: control target
= control target key end

     0   :  { %8 = vsyncpa [#allocation3], 0  ;;  %s935_s0 = inlined_call_operand.hbm [shape: f32[2,32,256], index: 0, kind: input, shape index: {}]   ;;  %s936_s1 = inlined_call_operand.vmem [shape: f32[2,32], index: 1, kind: input, shape index: {}]   ;;  %s937_s2 = inlined_call_operand.vmem [shape: f32[32,2], index: 2, kind: input, shape index: {}]   ;;  %s938_s3 = inlined_call_operand.hbm [shape: f32[2,32,256], index: 3, kind: output, shape index: {}]  }
   0x1   :  { %10 = vsyncpa [#allocation3 + $0x1], 0 }
   0x2   :  { %11 = vsyncpa [#allocation4], 0 }
   0x3   :  { %13 = vsyncpa [#allocation4 + $0x1], 0  ;;  %s719_s12 = smov 0   ;;  %s721_s13 = smov 0  }
   0x4   :  { %s723_s14 = smov 0   ;;  %s725_s15 = smov 0  }
   0x5 LB: > { %s740_s16 = sadd.s32 4294967295, %s693_s15   ;;  %s503_s17 = sadd.s32 4294967294, %s693_s15   ;;  %s693_s15 = sphi %s725_s15, %s948_s15   ;;  %s689_s14 = sphi %s723_s14, %s947_s14   ;;  %s685_s13 = sphi %s721_s13, %s946_s13   ;;  %s681_s12 = sphi %s719_s12, %s945_s12  }
   0x6   : > { %s744_s18 = sadd.s32 1, %s693_s15   ;;  %s26_s19 = sadd.s32 1, %s689_s14 }
   0x7   : > { %s23_s20 = ssub.s32 %s693_s15, %s744_s18  ;;  %p33_p0 = scmp.ne.s32.totalorder %s689_s14, %s685_s13 }
   0x8   : > { %p24_p1 = scmp.eq.s32.totalorder %s23_s20, 0  ;;  %p34_p2 = scmp.eq.s32.totalorder %s693_s15, 0 }
   0x9   : > { %p39_p3 = scmp.ne.s32.totalorder %s685_s13, %s681_s12  ;;  %p40_p4 = scmp.eq.s32.totalorder %s740_s16, 0 }
   0xa   : > { %s756_s21 = scalar_select %p24_p1, %s689_s14, %s26_s19  }
   0xb   : > { %p758_p5 = por %p34_p2, %p33_p0  ;;  %p762_p6 = por %p40_p4, %p39_p3 }
   0xc   : > { %p105_p7 = scmp.eq.s32.totalorder %s740_s16, 1  ;;  %p111_p8 = scmp.eq.s32.totalorder %s503_s17, 1 }
   0xd   : > { %p543_p10 = scmp.lt.s32.totalorder %s693_s15, 2  ;;  %s137_s26 = sand.u32 1, %s689_s14  }
   0xe   : > { %p769_p11 = por %p105_p7, %p33_p0  ;;  %p773_p12 = por %p111_p8, %p39_p3 }
   0xf   : > { %s527_s27 = sshll.u32 %s693_s15, 6  ;;  %s506_s28 = sshll.u32 %s137_s26, 6 }
  0x10   : > { %s146_s4 = scalar_lea.hbm %s935_s0, %s527_s27  ;;  %s141_s6 = scalar_lea.vmem [#allocation2], %s506_s28 }
  0x11   : > { %s147_s5 = sshll.u32 %s146_s4, 4  ;;  %s149_s7 = sshll.u32 %s141_s6, 4  ;;  %s148_s5 = int_to_ptr.hbm [resolvable:$true] %s147_s5  ;;  %s150_s7 = int_to_ptr.vmem [resolvable:$true] %s149_s7 }
  0x12   : > { %p784_p13 = pnand %p543_p10, %p758_p5  ;;  %p509_p0 = scmp.ge.s32.totalorder %s693_s15, 1 }
  0x13   : > { %p157_p1 = scmp.lt.s32.totalorder %s693_s15, 3  ;;  %s138_s9 = scalar_lea.sflag [#allocation3], %s137_s26 }
  0x14   : > { %s597_s10 = sshra.s32 %s148_s5, 4  ;;  %p601_p3 = pneg %p784_p13  ;;  %s598_s10 = int_to_ptr.hbm [resolvable:$true] %s597_s10 }
  0x15   : > { %s599_s11 = scalar_lea.hbm %s598_s10, 64  ;;  %s604_s20 = scalar_lea.hbm %s935_s0, 128 }
  0x16   : > { %p600_p2 = scmp.ne.s32.totalorder %s598_s10, %s599_s11  ;;  %p605_p5 = scmp.lt.s32.totalorder %s598_s10, %s935_s0 }
  0x17   : > { %p606_p8 = scmp.lt.s32.totalorder %s604_s20, %s599_s11 }
  0x18   : > { %p602_p4 = pnand %p601_p3, %p600_p2 }
  0x19   : > { %p607_p10 = por %p606_p8, %p605_p5 }
  0x1a   : > { %p603_p7 = pneg %p602_p4 }
  0x1c   : > { %p608_p9 = pnand %p607_p10, %p603_p7 }
  0x1e   : > { %611 = shalt.err (!%p608_p9)
}
  0x1f   : > { %s695_s26 = smov 256   ;;  %s696_s28 = smov 16  }
  0x20   : > { %538 = dma.hbm_to_vmem [thread:$0]  (!%p784_p13), %s148_s5, 1024, %s150_s7, %s138_s9, %s695_s26, %s695_s26, %s696_s28  }
  0x21   : > { %p158_p2 = pnand %p509_p0, %p157_p1 }
  0x22   : > { %s805_s29 = sand.u32 (!%p158_p2), 1, %s685_s13  }
  0x23   : > { %161 = sbr.rel (%p158_p2) target bundleno = 602 (0x25a), region = 32  ;;  %s510_s30 = sshll.u32 (!%p158_p2), %s805_s29, 6 }
  0x24   : > { %s164_s4 = scalar_lea.sflag (!%p158_p2), [#allocation3], %s805_s29  ;;  %s167_s6 = scalar_lea.vmem (!%p158_p2), [#allocation2], %s510_s30 }
  0x28   : > { %672 = dma.done.wait (%p762_p6), %s164_s4, 1024  }
  0x29   : > { %674 = vsyncadd (%p762_p6), %s164_s4, 4294966272  ;;  %v815_v0 = vld [vmem:[%s167_s6 + $0x30] sm:$0xff]  ;;  %v817_v1 = vld [vmem:[%s167_s6 + $0x38] sm:$0xff]  ;;  %v227_v16 = vlaneseq  ;;  %vm239_vm1 = vcmask 261120   ;;  %vm277_vm2 = vcmask 1041408   ;;  %vm264_vm3 = vcmask 15360  }
  0x2a   : > { %v819_v2 = vld [vmem:[%s167_s6 + $0x20] sm:$0xff]  ;;  %v208_v3 = vadd.f32 %v817_v1, %v815_v0  ;;  %v220_v4 = vmax.f32 %v815_v0, %v817_v1  ;;  %v825_v5 = vld [vmem:[%s167_s6 + $0x28] sm:$0xff]  ;;  %v829_v7 = vld [vmem:[%s167_s6 + $0x10] sm:$0xff]  ;;  %s881_s22 = scalar_lea.vmem [#allocation5], %s510_s30  ;;  %s528_s27 = sshll.u32 %s740_s16, 6 }
  0x2b   : > { %v217_v6 = vmax.f32 %v819_v2, %v825_v5  ;;  %v831_v8 = vld [vmem:[%s167_s6 + $0x18] sm:$0xff]  ;;  %v833_v9 = vld [vmem:[%s167_s6] sm:$0xff]  ;;  %v835_v10 = vld [vmem:[%s167_s6 + $0x8] sm:$0xff]  ;;  %v205_v11 = vadd.f32 %v825_v5, %v819_v2  ;;  %v228_v17 = vand.u32 127, %v227_v16  ;;  %s426_s28 = scalar_lea.hbm %s938_s3, %s528_s27  ;;  %s427_s30 = sshll.u32 %s881_s22, 4  ;;  %s428_s30 = int_to_ptr.vmem [resolvable:$true] %s427_s30 }
  0x2c   : > { %209 = vadd.xlane.f32.xlu0 %v208_v3  ;;  %221 = vmax.xlane.f32.xlu1 %v220_v4  ;;  %v202_v12 = vadd.f32 %v831_v8, %v829_v7  ;;  %v199_v13 = vadd.f32 %v835_v10, %v833_v9  ;;  %v214_v14 = vmax.f32 %v829_v7, %v831_v8  ;;  %v234_v34 = vld [vmem:[%s936_s1] sm:$0x3]  ;;  %v236_v38 = vld [vmem:[%s937_s2 + $0x8] sm:$0xff]  ;;  %v238_v39 = vld [vmem:[%s937_s2 + $0x18] sm:$0xff]  ;;  %s429_s4 = sshll.u32 %s426_s28, 4  ;;  %s415_s6 = scalar_lea.sflag [#allocation4], %s805_s29  ;;  %s430_s4 = int_to_ptr.hbm [resolvable:$true] %s429_s4 }
  0x2d   : > { %218 = vmax.xlane.f32.xlu2 %v217_v6  ;;  %v211_v15 = vmax.f32 %v833_v9, %v835_v10  ;;  %vm229_vm0 = vcmp.eq.s32.totalorder %v228_v17, 0  ;;  %v235_v37 = vld [vmem:[%s937_s2] sm:$0xff]  ;;  %v237_v40 = vld [vmem:[%s937_s2 + $0x10] sm:$0xff]  ;;  %s641_s23 = sshra.s32 %s430_s4, 4  ;;  %s647_s9 = scalar_lea.hbm %s938_s3, 128  ;;  %s642_s23 = int_to_ptr.hbm [resolvable:$true] %s641_s23 }
  0x2e   : > { %s643_s5 = scalar_lea.hbm %s642_s23, 64  ;;  %p648_p0 = scmp.lt.s32.totalorder %s642_s23, %s938_s3 }
  0x2f   : > { %p644_p6 = scmp.ne.s32.totalorder %s642_s23, %s643_s5  ;;  %p649_p1 = scmp.lt.s32.totalorder %s647_s9, %s643_s5 }
  0x31   : > { %p645_p9 = pnand %p644_p6, %p769_p11  ;;  %p650_p3 = por %p649_p1, %p648_p0 }
  0x33   : > { %p646_p13 = pneg %p645_p9 }
  0x34   : > { %206 = vadd.xlane.f32.xlu0 %v205_v11  ;;  %203 = vadd.xlane.f32.xlu1 %v202_v12 }
  0x35   : > { %200 = vadd.xlane.f32.xlu2 %v199_v13  ;;  %p651_p4 = pnand %p650_p3, %p646_p13 }
  0x3c   : > { %215 = vmax.xlane.f32.xlu0 %v214_v14  ;;  %212 = vmax.xlane.f32.xlu1 %v211_v15 }
  0x9f   : > { %v210_v18 = vpop.xlane.xlu0 %209  ;;  %v222_v19 = vpop.xlane.xlu1 %221 }
  0xa0   : > { %v226_v20 = vmul.f32 0.00390625, %v210_v18  ;;  %v219_v21 = vpop.xlane.xlu2 %218 }
  0xa2   : > { %v233_v22 = vsel %vm229_vm0, %v226_v20, %v222_v19 }
  0xa3   : > { %255 = vmatpush.msra.mxu0 %v233_v22 }
  0xa7   : > { %v207_v23 = vpop.xlane.xlu0 %206  ;;  %v204_v24 = vpop.xlane.xlu1 %203 }
  0xa8   : > { %v225_v25 = vmul.f32 0.00390625, %v207_v23  ;;  %v201_v26 = vpop.xlane.xlu2 %200  ;;  %v224_v29 = vmul.f32 0.00390625, %v204_v24 }
  0xa9   : > { %v223_v28 = vmul.f32 0.00390625, %v201_v26 }
  0xaa   : > { %v232_v27 = vsel %vm229_vm0, %v225_v25, %v219_v21 }
  0xab   : > { %256 = vmatpush.msra.mxu0 %v232_v27 }
  0xaf   : > { %v216_v30 = vpop.xlane.xlu0 %215  ;;  %v213_v31 = vpop.xlane.xlu1 %212 }
  0xb0   : > { %v231_v32 = vsel %vm229_vm0, %v224_v29, %v216_v30  ;;  %v230_v33 = vsel %vm229_vm0, %v223_v28, %v213_v31 }
  0xb1   : > { %257 = vmatpush.msra.mxu0 %v231_v32 }
  0xb3   : > { %258 = vmatpush.msra.mxu0 %v230_v33 }
  0xb4   : > { %512 = vmatmul.msk.f32.vlgmr.msra.gmra.mxu0 %vm239_vm1, %v234_v34 }
 0x131   : > { %v260_v35 = vpop.f32.mrf.mxu0 }
 0x132   : > { %v263_v36 = vmax.f32 %v260_v35, 0.0 }
 0x134   : > { %513 = vmatpush.msk.msra.mxu1 %vm277_vm2, %v263_v36  ;;  %529 = vmatpush.msk.msra.mxu2 %vm277_vm2, %v263_v36 }
 0x135   : > { %530 = vmatpush.msk.msra.mxu3 %vm277_vm2, %v263_v36  ;;  %514 = vmatmul.msk.f32.vlgmr.msra.gmra.mxu1 %vm264_vm3, %v235_v37 }
 0x136   : > { %515 = vmatmul.msk.f32.vlgmr.msra.gmra.mxu2 %vm264_vm3, %v236_v38  ;;  %517 = vmatmul.msk.f32.vlgmr.msra.gmra.mxu3 %vm264_vm3, %v238_v39 }
 0x13e   : > { %516 = vmatmul.msk.f32.gmra.mxu2 %vm264_vm3, %v237_v40 }
 0x1b2   : > { %v298_v41 = vpop.f32.mrf.mxu1 }
 0x1b3   : > { %v310_v42 = vsel %vm264_vm3, %v298_v41, 0.0 }
 0x1b4   : > { %311 = vadd.xlane.f32.xlu2 %v310_v42 }
 0x1b9   : > { %v301_v43 = vpop.f32.mrf.mxu2  ;;  %v307_v44 = vpop.f32.mrf.mxu3 }
 0x1ba   : > { %v313_v45 = vsel %vm264_vm3, %v301_v43, 0.0  ;;  %v319_v46 = vsel %vm264_vm3, %v307_v44, 0.0 }
 0x1bb   : > { %314 = vadd.xlane.f32.xlu0 %v313_v45 }
 0x1bc   : > { %320 = vadd.xlane.f32.xlu2 %v319_v46 }
 0x1c1   : > { %v304_v47 = vpop.f32.mrf.mxu2 }
 0x1c2   : > { %v316_v48 = vsel %vm264_vm3, %v304_v47, 0.0 }
 0x1c3   : > { %317 = vadd.xlane.f32.xlu1 %v316_v48 }
 0x227   : > { %v312_v49 = vpop.xlane.xlu2 %311 }
 0x228   : > { %v518_v50 = vmul.f32 -1.442695, %v312_v49 }
 0x22a   : > { %581 = vpow2.f32 %v518_v50 }
 0x22e   : > { %v315_v51 = vpop.xlane.xlu0 %314 }
 0x22f   : > { %v519_v52 = vmul.f32 -1.442695, %v315_v51  ;;  %v321_v53 = vpop.xlane.xlu2 %320 }
 0x230   : > { %v582_v54 = vpop.eup %581  ;;  %v521_v55 = vmul.f32 -1.442695, %v321_v53 }
 0x231   : > { %v334_v56 = vadd.f32 1.0, %v582_v54  ;;  %583 = vpow2.f32 %v519_v52 }
 0x232   : > { %585 = vpow2.f32 %v521_v55 }
 0x233   : > { %587 = vrcp.f32 %v334_v56  ;;  %v349_v6 = vand.u32 2147483648, %v334_v56  ;;  %vm343_vm4 = vweird.f32 %v334_v56  ;;  %v347_v12 = vand.u32 2147483647, %v334_v56 }
 0x235   : > { %v350_v18 = vor.u32 1.1754944e-38, %v349_v6  ;;  %vm348_vm7 = vcmp.eq.f32.partialorder %v347_v12, 8.507059e+37 }
 0x236   : > { %v318_v57 = vpop.xlane.xlu1 %317 }
 0x237   : > { %v584_v58 = vpop.eup %583  ;;  %v520_v59 = vmul.f32 -1.442695, %v318_v57 }
 0x238   : > { %v586_v60 = vpop.eup %585  ;;  %v335_v61 = vadd.f32 1.0, %v584_v58 }
 0x239   : > { %v588_v62 = vpop.eup %587  ;;  %v337_v63 = vadd.f32 1.0, %v586_v60  ;;  %589 = vpow2.f32 %v520_v59 }
 0x23a   : > { %v339_v3 = vmul.f32 %v588_v62, %v334_v56  ;;  %591 = vrcp.f32 %v335_v61  ;;  %vm344_vm5 = vweird.f32 %v588_v62  ;;  %v364_v26 = vand.u32 2147483648, %v335_v61 }
 0x23b   : > { %593 = vrcp.f32 %v337_v63  ;;  %vm345_vm6 = vmor %vm343_vm4, %vm344_vm5  ;;  %v362_v29 = vand.u32 2147483647, %v335_v61  ;;  %v394_v30 = vand.u32 2147483648, %v337_v63  ;;  %vm388_vm9 = vweird.f32 %v337_v63 }
 0x23c   : > { %v340_v4 = vsub.f32 1.0, %v339_v3  ;;  %v392_v32 = vand.u32 2147483647, %v337_v63  ;;  %vm358_vm11 = vweird.f32 %v335_v61  ;;  %v365_v33 = vor.u32 1.1754944e-38, %v364_v26 }
 0x23d   : > { %vm363_vm13 = vcmp.eq.f32.partialorder %v362_v29, 8.507059e+37  ;;  %v395_v36 = vor.u32 1.1754944e-38, %v394_v30 }
 0x23e   : > { %v341_v11 = vmul.f32 %v588_v62, %v340_v4  ;;  %vm393_vm15 = vcmp.eq.f32.partialorder %v392_v32, 8.507059e+37 }
 0x23f   : > { %v590_v13 = vpop.eup %589 }
 0x240   : > { %v592_v14 = vpop.eup %591  ;;  %v342_v15 = vadd.f32 %v588_v62, %v341_v11  ;;  %v874_v16 = vadd.f32 1.0, %v590_v13 }
 0x241   : > { %v594_v17 = vpop.eup %593  ;;  %v354_v19 = vmul.f32 %v592_v14, %v335_v61  ;;  %vm359_vm8 = vweird.f32 %v592_v14 }
 0x242   : > { %v346_v20 = vsel %vm345_vm6, %v588_v62, %v342_v15  ;;  %v384_v21 = vmul.f32 %v594_v17, %v337_v63  ;;  %595 = vrcp.f32 %v874_v16  ;;  %vm389_vm10 = vweird.f32 %v594_v17  ;;  %vm360_vm12 = vmor %vm358_vm11, %vm359_vm8 }
 0x243   : > { %v351_v22 = vsel %vm348_vm7, %v350_v18, %v346_v20  ;;  %v355_v23 = vsub.f32 1.0, %v354_v19  ;;  %vm390_vm14 = vmor %vm388_vm9, %vm389_vm10  ;;  %v379_v46 = vand.u32 2147483648, %v874_v16  ;;  %v377_v48 = vand.u32 2147483647, %v874_v16 }
 0x244   : > { %v398_v24 = vmul.f32 %v351_v22, %v833_v9  ;;  %v399_v25 = vmul.f32 %v351_v22, %v835_v10  ;;  %v385_v27 = vsub.f32 1.0, %v384_v21  ;;  %vm373_vm1 = vweird.f32 %v874_v16 }
 0x245   : > { %v356_v28 = vmul.f32 %v592_v14, %v355_v23  ;;  %vm378_vm3 = vcmp.eq.f32.partialorder %v377_v48, 8.507059e+37 }
 0x246   : > { %406 = vst [vmem:[%s881_s22] sm:$0xff] %v398_v24  ;;  %v386_v31 = vmul.f32 %v594_v17, %v385_v27 }
 0x247   : > { %407 = vst [vmem:[%s881_s22 + $0x8] sm:$0xff] %v399_v25  ;;  %v357_v9 = vadd.f32 %v592_v14, %v356_v28 }
 0x248   : > { %v596_v10 = vpop.eup %595  ;;  %v387_v34 = vadd.f32 %v594_v17, %v386_v31 }
 0x249   : > { %v361_v35 = vsel %vm360_vm12, %v592_v14, %v357_v9  ;;  %v369_v37 = vmul.f32 %v596_v10, %v874_v16  ;;  %vm374_vm0 = vweird.f32 %v596_v10 }
 0x24a   : > { %v366_v38 = vsel %vm363_vm13, %v365_v33, %v361_v35  ;;  %v391_v39 = vsel %vm390_vm14, %v594_v17, %v387_v34  ;;  %vm375_vm2 = vmor %vm373_vm1, %vm374_vm0 }
 0x24b   : > { %v400_v40 = vmul.f32 %v366_v38, %v829_v7  ;;  %v401_v41 = vmul.f32 %v366_v38, %v831_v8  ;;  %v396_v42 = vsel %vm393_vm15, %v395_v36, %v391_v39  ;;  %v370_v43 = vsub.f32 1.0, %v369_v37 }
 0x24c   : > { %v404_v44 = vmul.f32 %v396_v42, %v815_v0  ;;  %v405_v45 = vmul.f32 %v396_v42, %v817_v1  ;;  %v380_v0 = vor.u32 1.1754944e-38, %v379_v46 }
 0x24d   : > { %408 = vst [vmem:[%s881_s22 + $0x10] sm:$0xff] %v400_v40  ;;  %v371_v47 = vmul.f32 %v596_v10, %v370_v43 }
 0x24e   : > { %409 = vst [vmem:[%s881_s22 + $0x18] sm:$0xff] %v401_v41 }
 0x24f   : > { %412 = vst [vmem:[%s881_s22 + $0x30] sm:$0xff] %v404_v44  ;;  %v372_v7 = vadd.f32 %v596_v10, %v371_v47 }
 0x250   : > { %413 = vst [vmem:[%s881_s22 + $0x38] sm:$0xff] %v405_v45 }
 0x251   : > { %v376_v1 = vsel %vm375_vm2, %v596_v10, %v372_v7 }
 0x252   : > { %v381_v8 = vsel %vm378_vm3, %v380_v0, %v376_v1 }
 0x253   : > { %v402_v49 = vmul.f32 %v381_v8, %v819_v2  ;;  %v403_v50 = vmul.f32 %v381_v8, %v825_v5 }
 0x255   : > { %410 = vst [vmem:[%s881_s22 + $0x20] sm:$0xff] %v402_v49 }
 0x256   : > { %411 = vst [vmem:[%s881_s22 + $0x28] sm:$0xff] %v403_v50 }
 0x257   : > { %654 = shalt.err (!%p651_p4)
}
 0x258   : > { %s697_s29 = smov 256   ;;  %s698_s17 = smov 16  }
 0x259   : > { %533 = dma.vmem_to_hbm [thread:$0]  (%p769_p11), %s428_s30, 1024, %s430_s4, %s415_s6, %s697_s29, %s697_s29, %s698_s17  }
 0x25a PF: > { %s444_s19 = sand.u32 1, %s681_s12   ;;  %p944_p7 = scmp.ge.s32.totalorder %s693_s15, 2 }
 0x25b   : > { %s445_s20 = scalar_lea.sflag [#allocation4], %s444_s19 }
 0x25c   : > { %p540_p5 = pnand %p944_p7, %p773_p12 }
 0x25e   : > { %p541_p8 = pneg %p540_p5 }
 0x260   : > { %676 = dma.done.wait (%p541_p8), %s445_s20, 1024  }
 0x261   : > { %678 = vsyncadd (%p541_p8), %s445_s20, 4294966272  ;;  %p16_p10 = scmp.ge.s32.totalorder %s744_s18, 4   ;;  %s945_s12 = smov %s685_s13 }
 0x262   : > { %s946_s13 = smov %s689_s14  ;;  %s947_s14 = smov %s756_s21 }
 0x263   : > { %s948_s15 = smov %s744_s18  ;;  %18 = sbr.rel (!%p16_p10) target bundleno = 5 (0x5), region = 77 }
 0x268   :  { %451 = vsyncpa [#allocation3], 1 }
 0x269   :  { %453 = vsyncpa [#allocation3 + $0x1], 1 }
 0x26a   :  { %454 = vsyncpa [#allocation4], 1 }
 0x26b   :  { %456 = vsyncpa [#allocation4 + $0x1], 1 }

</bundles_post_ra>
